<compile_context>
chip_gen: v5e
topology: v5e:2x2
jax: 0.10.0
libtpu: 0.0.40
codegen_flags: <defaults>
</compile_context>

<pallas_src>
import functools

import jax
import jax.numpy as jnp
from jax.experimental import pallas as pl
from jax.experimental.pallas import tpu as pltpu


def _round_up(x, m):
    return ((x + m - 1) // m) * m


def _leaky_relu(x, negative_slope=0.01):
    # Matches torch.nn.functional.leaky_relu default (negative_slope=0.01).
    return jnp.where(x > 0, x, negative_slope * x)


def _tpu_vmem_capacity_and_cores():
    """Best-effort query of physical VMEM bytes and TensorCores per chip."""
    vmem_cap = 64 * 1024 * 1024  # conservative default (v7x)
    try:
        info = pltpu.get_tpu_info()
        vmem_cap = int(getattr(info, "vmem_capacity_bytes", vmem_cap))
    except Exception:
        pass
    cores = 1
    try:
        kind = jax.devices()[0].device_kind.lower()
        if "v7" in kind or "7x" in kind:
            cores = 2
    except Exception:
        pass
    return vmem_cap, cores


def _vmem_tile_bytes(tb, D, H1, H2):
    """Per-step VMEM footprint estimate including (8,128) layout padding."""
    f32 = 4
    lane = lambda n: _round_up(n, 128)
    sub = lambda n: _round_up(n, 8)
    tbp = sub(tb)
    x_buf = 2 * tbp * lane(D) * f32                      # double-buffered x tile (lane padded)
    out_buf = 2 * 8 * lane(tb) * f32                     # double-buffered (1,1,tb) out block
    w_buf = 2 * f32 * (sub(D) * lane(H1) + 8 * lane(H1)
                       + sub(H1) * lane(H2) + 8 * lane(H2)
                       + 8 * lane(H2) + 8 * 128)         # resident weights / biases
    act = 4 * tbp * lane(max(D, H1, H2)) * f32           # x/h1/h2 values + one temp
    return x_buf + out_buf + w_buf + act


def _select_batch_tile(B, D, H1, H2, batch_tile, vmem_budget):
    if B < batch_tile:
        tb = _round_up(B, 128) if B >= 128 else _round_up(max(B, 1), 8)
    else:
        tb = max(128, _round_up(batch_tile, 128))
    while tb > 128 and _vmem_tile_bytes(tb, D, H1, H2) > vmem_budget:
        tb = max(128, _round_up(tb // 2, 128))
    return tb


def _discriminator_kernel(x_ref, w1_ref, b1_ref, w2_ref, b2_ref, w3_ref, b3_ref,
                          out_ref):
    """Fused forward pass for one batch tile.

    x_ref : [TB, D]      input tile
    w1_ref: [D,  H1]     b1_ref: [1, H1]
    w2_ref: [H1, H2]     b2_ref: [1, H2]
    w3_ref: [1,  H2]     b3_ref: [1, 1]     (output layer stored as a row)
    out_ref:[1, 1, TB]   sigmoid probabilities, batch on the lane axis (dense)
    """
    x = x_ref[...]

    # hidden layer 1 + leaky_relu (MXU, f32 accumulate)
    h1 = jnp.dot(x, w1_ref[...], preferred_element_type=jnp.float32) + b1_ref[...]
    h1 = _leaky_relu(h1)

    # hidden layer 2 + leaky_relu
    h2 = jnp.dot(h1, w2_ref[...], preferred_element_type=jnp.float32) + b2_ref[...]
    h2 = _leaky_relu(h2)

    # Output layer: contract H2 (the minor dim of both operands), so the batch
    # dimension lands on lanes -> logits [1, TB] is lane-dense.  This is the same
    # contraction pattern the MXU handles natively for q.k^T in attention.
    logits = jax.lax.dot_general(
        w3_ref[...], h2, (((1,), (1,)), ((), ())),
        preferred_element_type=jnp.float32) + b3_ref[...]          # [1, TB]

    # sigmoid on dense vregs; store is a lane-dense (unmasked) write.
    out_ref[0] = (1.0 / (1.0 + jnp.exp(-logits))).astype(out_ref.dtype)


@functools.partial(jax.jit, static_argnames=("batch_tile",))
def nn_discriminator_forward(x, params, *, batch_tile=8192):
    """Forward pass of NNDiscriminator. x: [B, D] -> probs: [B, 1]."""
    w1, b1, w2, b2, w3, b3 = params
    B, D = x.shape
    H1 = w1.shape[1]
    H2 = w2.shape[1]

    vmem_cap, num_cores = _tpu_vmem_capacity_and_cores()
    vmem_budget = min(int(0.5 * vmem_cap), 48 * 1024 * 1024)

    # Large, VMEM-accurate batch tile (amortizes per-grid-step overhead); tiny
    # batches get a single sublane-quantum tile instead of padding to 256 rows.
    tb = _select_batch_tile(B, D, H1, H2, batch_tile, vmem_budget)

    n_tiles = pl.cdiv(B, tb)
    # Even tile count only matters for two-TensorCore chips (v7x); on v5e/v6e the
    # extra padded tile would be pure wasted HBM traffic.
    if num_cores >= 2 and n_tiles > 1 and n_tiles % 2 == 1:
        n_tiles += 1
    b_pad = n_tiles * tb
    if b_pad != B:
        x = jnp.pad(x, ((0, b_pad - B), (0, 0)))

    est = _vmem_tile_bytes(tb, D, H1, H2)
    upper = min(96 * 1024 * 1024, vmem_cap - 8 * 1024 * 1024)
    vmem_limit = int(min(upper, max(32 * 1024 * 1024, est + 12 * 1024 * 1024)))

    rep2 = lambda i: (0, 0)   # weights/biases: constant block index -> resident

    out = pl.pallas_call(
        _discriminator_kernel,
        out_shape=jax.ShapeDtypeStruct((n_tiles, 1, tb), jnp.float32),
        grid_spec=pltpu.PrefetchScalarGridSpec(
            num_scalar_prefetch=0,
            grid=(n_tiles,),
            in_specs=[
                pl.BlockSpec((tb, D), lambda i: (i, 0)),   # x tile
                pl.BlockSpec((D, H1), rep2),               # w1
                pl.BlockSpec((1, H1), rep2),               # b1
                pl.BlockSpec((H1, H2), rep2),              # w2
                pl.BlockSpec((1, H2), rep2),               # b2
                pl.BlockSpec((1, H2), rep2),               # w3 (row)
                pl.BlockSpec((1, 1), rep2),                # b3
            ],
            out_specs=pl.BlockSpec((1, 1, tb), lambda i: (i, 0, 0)),
        ),
        compiler_params=pltpu.CompilerParams(
            dimension_semantics=("parallel",),
            vmem_limit_bytes=vmem_limit,
        ),
    )(x, w1, b1, w2, b2, w3, b3)

    # (n_tiles, 1, tb) row-major == batch order; back to [B, 1].
    return out.reshape(b_pad, 1)[:B]


def init_params(key, input_dim, hidden_sizes=(32, 32)):
    """nn.Linear-style init (U(-1/sqrt(fan_in), 1/sqrt(fan_in))); output weight
    scaled by 0.1 and output bias zeroed, as in the module __init__."""
    params = []
    last = input_dim
    keys = jax.random.split(key, 2 * (len(hidden_sizes) + 1))
    ki = 0
    for h in hidden_sizes:
        bound = 1.0 / (last ** 0.5)
        w = jax.random.uniform(keys[ki], (last, h), jnp.float32, -bound, bound); ki += 1
        b = jax.random.uniform(keys[ki], (1, h), jnp.float32, -bound, bound); ki += 1
        params += [w, b]
        last = h
    bound = 1.0 / (last ** 0.5)
    # Output layer stored as a [1, H2] row (kernel contracts it against h2).
    w_out = jax.random.uniform(keys[ki], (1, last), jnp.float32, -bound, bound) * 0.1
    b_out = jnp.zeros((1, 1), jnp.float32)
    params += [w_out, b_out]
    return tuple(params)


def reference_forward(x, params):
    w1, b1, w2, b2, w3, b3 = params
    h = jax.nn.leaky_relu(x @ w1 + b1, 0.01)
    h = jax.nn.leaky_relu(h @ w2 + b2, 0.01)
    return jax.nn.sigmoid(h @ w3.T + b3)


if __name__ == "__main__":
    key = jax.random.PRNGKey(0)
    k_param, k_x, k_x2 = jax.random.split(key, 3)

    input_dim = 16
    hidden_sizes = (32, 32)
    params = init_params(k_param, input_dim, hidden_sizes)

    # Small batch consistent with the module (obs/action features).
    x = jax.random.normal(k_x, (16, input_dim), jnp.float32)
    probs = jax.block_until_ready(nn_discriminator_forward(x, params))
    ref = reference_forward(x, params)
    assert probs.shape == (16, 1)
    assert jnp.allclose(probs, ref, atol=5e-4, rtol=5e-4), "mismatch vs JAX reference (small batch)"

    # Ragged batch: exercises padding, multi-tile grid, and lane-dense output slab.
    x2 = jax.random.normal(k_x2, (700, input_dim), jnp.float32)
    probs2 = jax.block_until_ready(nn_discriminator_forward(x2, params, batch_tile=256))
    ref2 = reference_forward(x2, params)
    assert probs2.shape == (700, 1)
    assert jnp.allclose(probs2, ref2, atol=5e-4, rtol=5e-4), "mismatch vs JAX reference (ragged batch)"

    print("KERNEL_OK")
</pallas_src>

<mosaic_0001>
module attributes {stable_mosaic.version = 11 : i64} {
  func.func @_discriminator_kernel(%arg0: i32, %arg1: memref<16x16xf32, #tpu.memory_space<vmem>>, %arg2: memref<16x32xf32, #tpu.memory_space<vmem>>, %arg3: memref<1x32xf32, #tpu.memory_space<vmem>>, %arg4: memref<32x32xf32, #tpu.memory_space<vmem>>, %arg5: memref<1x32xf32, #tpu.memory_space<vmem>>, %arg6: memref<1x32xf32, #tpu.memory_space<vmem>>, %arg7: memref<1x1xf32, #tpu.memory_space<vmem>>, %arg8: memref<1x1x16xf32, #tpu.memory_space<vmem>>) attributes {dimension_semantics = [#tpu.dimension_semantics<parallel>], iteration_bounds = array<i64: 1>, scalar_prefetch = 0 : i64, scratch_operands = 0 : i64, tpu.core_type = #tpu.core_type<tc>, window_params = [{transform_indices = @transform_0, window_bounds = array<i64: 16, 16>}, {pipeline_mode = #tpu.pipeline_mode<synchronous>, transform_indices = @transform_1, window_bounds = array<i64: 16, 32>}, {pipeline_mode = #tpu.pipeline_mode<synchronous>, transform_indices = @transform_2, window_bounds = array<i64: 1, 32>}, {pipeline_mode = #tpu.pipeline_mode<synchronous>, transform_indices = @transform_3, window_bounds = array<i64: 32, 32>}, {pipeline_mode = #tpu.pipeline_mode<synchronous>, transform_indices = @transform_4, window_bounds = array<i64: 1, 32>}, {pipeline_mode = #tpu.pipeline_mode<synchronous>, transform_indices = @transform_5, window_bounds = array<i64: 1, 32>}, {pipeline_mode = #tpu.pipeline_mode<synchronous>, transform_indices = @transform_6, window_bounds = array<i64: 1, 1>}, {transform_indices = @transform_7, window_bounds = array<i64: 1, 1, 16>}]} {
    %c0 = arith.constant 0 : index
    %c0_0 = arith.constant 0 : index
    %0 = vector.load %arg1[%c0, %c0_0] : memref<16x16xf32, #tpu.memory_space<vmem>>, vector<16x16xf32>
    %c0_1 = arith.constant 0 : index
    %c0_2 = arith.constant 0 : index
    %1 = vector.load %arg2[%c0_1, %c0_2] : memref<16x32xf32, #tpu.memory_space<vmem>>, vector<16x32xf32>
    %cst = arith.constant dense<0.000000e+00> : vector<16x32xf32>
    %2 = tpu.matmul %0, %1, %cst {dimension_numbers = #tpu.dot_dimension_numbers<[1], [0], [0], [1], [0, 0, 1, 1], [], []>} : vector<16x16xf32>, vector<16x32xf32>, vector<16x32xf32> -> vector<16x32xf32>
    %c0_3 = arith.constant 0 : index
    %c0_4 = arith.constant 0 : index
    %3 = vector.load %arg3[%c0_3, %c0_4] : memref<1x32xf32, #tpu.memory_space<vmem>>, vector<1x32xf32>
    %4 = vector.broadcast %3 : vector<1x32xf32> to vector<16x32xf32>
    %5 = arith.addf %2, %4 : vector<16x32xf32>
    %cst_5 = arith.constant 0.000000e+00 : f32
    %6 = vector.broadcast %cst_5 : f32 to vector<16x32xf32>
    %7 = arith.cmpf ogt, %5, %6 : vector<16x32xf32>
    %cst_6 = arith.constant 0.00999999977 : f32
    %8 = vector.broadcast %cst_6 : f32 to vector<16x32xf32>
    %9 = arith.mulf %8, %5 : vector<16x32xf32>
    %10 = arith.select %7, %5, %9 : vector<16x32xi1>, vector<16x32xf32>
    %c0_7 = arith.constant 0 : index
    %c0_8 = arith.constant 0 : index
    %11 = vector.load %arg4[%c0_7, %c0_8] : memref<32x32xf32, #tpu.memory_space<vmem>>, vector<32x32xf32>
    %cst_9 = arith.constant dense<0.000000e+00> : vector<16x32xf32>
    %12 = tpu.matmul %10, %11, %cst_9 {dimension_numbers = #tpu.dot_dimension_numbers<[1], [0], [0], [1], [0, 0, 1, 1], [], []>} : vector<16x32xf32>, vector<32x32xf32>, vector<16x32xf32> -> vector<16x32xf32>
    %c0_10 = arith.constant 0 : index
    %c0_11 = arith.constant 0 : index
    %13 = vector.load %arg5[%c0_10, %c0_11] : memref<1x32xf32, #tpu.memory_space<vmem>>, vector<1x32xf32>
    %14 = vector.broadcast %13 : vector<1x32xf32> to vector<16x32xf32>
    %15 = arith.addf %12, %14 : vector<16x32xf32>
    %cst_12 = arith.constant 0.000000e+00 : f32
    %16 = vector.broadcast %cst_12 : f32 to vector<16x32xf32>
    %17 = arith.cmpf ogt, %15, %16 : vector<16x32xf32>
    %cst_13 = arith.constant 0.00999999977 : f32
    %18 = vector.broadcast %cst_13 : f32 to vector<16x32xf32>
    %19 = arith.mulf %18, %15 : vector<16x32xf32>
    %20 = arith.select %17, %15, %19 : vector<16x32xi1>, vector<16x32xf32>
    %c0_14 = arith.constant 0 : index
    %c0_15 = arith.constant 0 : index
    %21 = vector.load %arg6[%c0_14, %c0_15] : memref<1x32xf32, #tpu.memory_space<vmem>>, vector<1x32xf32>
    %cst_16 = arith.constant dense<0.000000e+00> : vector<1x16xf32>
    %22 = tpu.matmul %21, %20, %cst_16 {dimension_numbers = #tpu.dot_dimension_numbers<[1], [1], [0], [0], [0, 0, 1, 0], [], []>} : vector<1x32xf32>, vector<16x32xf32>, vector<1x16xf32> -> vector<1x16xf32>
    %c0_17 = arith.constant 0 : index
    %c0_18 = arith.constant 0 : index
    %23 = vector.load %arg7[%c0_17, %c0_18] : memref<1x1xf32, #tpu.memory_space<vmem>>, vector<1x1xf32>
    %24 = vector.broadcast %23 : vector<1x1xf32> to vector<1x16xf32>
    %25 = arith.addf %22, %24 : vector<1x16xf32>
    %cst_19 = arith.constant 0.000000e+00 : f32
    %26 = vector.broadcast %cst_19 : f32 to vector<1x16xf32>
    %27 = arith.subf %26, %25 : vector<1x16xf32>
    %28 = math.exp %27 : vector<1x16xf32>
    %cst_20 = arith.constant 1.000000e+00 : f32
    %29 = vector.broadcast %cst_20 : f32 to vector<1x16xf32>
    %30 = arith.addf %29, %28 : vector<1x16xf32>
    %cst_21 = arith.constant 1.000000e+00 : f32
    %31 = vector.broadcast %cst_21 : f32 to vector<1x16xf32>
    %32 = arith.divf %31, %30 : vector<1x16xf32>
    %c0_22 = arith.constant 0 : index
    %c0_23 = arith.constant 0 : index
    %c0_24 = arith.constant 0 : index
    %33 = vector.load %arg8[%c0_22, %c0_23, %c0_24] : memref<1x1x16xf32, #tpu.memory_space<vmem>>, vector<1x1x16xf32>
    %34 = vector.shape_cast %33 : vector<1x1x16xf32> to vector<1x16xf32>
    %35 = vector.shape_cast %32 : vector<1x16xf32> to vector<1x1x16xf32>
    tpu.vector_store %arg8[%c0_22, %c0_23, %c0_24], %35 {strides = array<i32>} : memref<1x1x16xf32, #tpu.memory_space<vmem>>, vector<1x1x16xf32>,
    return
  }
  func.func @transform_0(%arg0: i32) -> (i32, i32) {
    %c0_i32 = arith.constant 0 : i32
    %c0_i32_0 = arith.constant 0 : i32
    return %arg0, %c0_i32 : i32, i32
  }
  func.func @transform_1(%arg0: i32) -> (i32, i32) {
    %c0_i32 = arith.constant 0 : i32
    %c0_i32_0 = arith.constant 0 : i32
    %c0_i32_1 = arith.constant 0 : i32
    return %c0_i32, %c0_i32_0 : i32, i32
  }
  func.func @transform_2(%arg0: i32) -> (i32, i32) {
    %c0_i32 = arith.constant 0 : i32
    %c0_i32_0 = arith.constant 0 : i32
    %c0_i32_1 = arith.constant 0 : i32
    return %c0_i32, %c0_i32_0 : i32, i32
  }
  func.func @transform_3(%arg0: i32) -> (i32, i32) {
    %c0_i32 = arith.constant 0 : i32
    %c0_i32_0 = arith.constant 0 : i32
    %c0_i32_1 = arith.constant 0 : i32
    return %c0_i32, %c0_i32_0 : i32, i32
  }
  func.func @transform_4(%arg0: i32) -> (i32, i32) {
    %c0_i32 = arith.constant 0 : i32
    %c0_i32_0 = arith.constant 0 : i32
    %c0_i32_1 = arith.constant 0 : i32
    return %c0_i32, %c0_i32_0 : i32, i32
  }
  func.func @transform_5(%arg0: i32) -> (i32, i32) {
    %c0_i32 = arith.constant 0 : i32
    %c0_i32_0 = arith.constant 0 : i32
    %c0_i32_1 = arith.constant 0 : i32
    return %c0_i32, %c0_i32_0 : i32, i32
  }
  func.func @transform_6(%arg0: i32) -> (i32, i32) {
    %c0_i32 = arith.constant 0 : i32
    %c0_i32_0 = arith.constant 0 : i32
    %c0_i32_1 = arith.constant 0 : i32
    return %c0_i32, %c0_i32_0 : i32, i32
  }
  func.func @transform_7(%arg0: i32) -> (i32, i32, i32) {
    %c0_i32 = arith.constant 0 : i32
    %c0_i32_0 = arith.constant 0 : i32
    %c0_i32_1 = arith.constant 0 : i32
    return %arg0, %c0_i32, %c0_i32_0 : i32, i32, i32
  }
}

</mosaic_0001>

<bundles_post_ra>
// kernel: nn_discriminator_forward.1
= control target key start
LH: loop header
LB: loop body
LE: loop exit
PB: predicated region body
PF: predicated region fallthrough
CT: control target
= control target key end

     0   :  { %s443_s0 = inlined_call_operand.hbm [shape: f32[16,16], index: 0, kind: input, shape index: {}]   ;;  %s444_s1 = inlined_call_operand.hbm [shape: f32[16,32], index: 1, kind: input, shape index: {}]   ;;  %s445_s2 = inlined_call_operand.vmem [shape: f32[1,32], index: 2, kind: input, shape index: {}]   ;;  %s446_s3 = inlined_call_operand.hbm [shape: f32[32,32], index: 3, kind: input, shape index: {}]   ;;  %s447_s4 = inlined_call_operand.vmem [shape: f32[1,32], index: 4, kind: input, shape index: {}]   ;;  %s448_s5 = inlined_call_operand.vmem [shape: f32[1,32], index: 5, kind: input, shape index: {}]   ;;  %s449_s6 = inlined_call_operand.<no memory space> [shape: f32[1,1], index: 6, kind: input, shape index: {}]   ;;  %s450_s7 = inlined_call_operand.hbm [shape: f32[1,1,16], index: 7, kind: output, shape index: {}]  }
   0x1   :  { %v12_v0 = vstv %s449_s6 }
   0x2   :  { %13 = vst [vmem:[#allocation2] sm:$0x1] %v12_v0 }
   0x3   :  { %14 = vsyncpa [#allocation4], 0 }
   0x4   :  { %15 = vsyncpa [#allocation7], 0 }
   0x5   :  { %16 = vsyncpa [#allocation5], 0  ;;  %s34_s28 = sshll.u32 %s444_s1, 4  ;;  %s367_s29 = smov [#allocation6]   ;;  %s35_s28 = int_to_ptr.hbm [resolvable:$true] %s34_s28 }
   0x6   :  { %s36_s30 = sshll.u32 %s367_s29, 4  ;;  %s21_s10 = sshll.u32 %s443_s0, 4  ;;  %s37_s30 = int_to_ptr.vmem [resolvable:$true] %s36_s30  ;;  %s22_s10 = int_to_ptr.hbm [resolvable:$true] %s21_s10 }
   0x7   :  { %s368_s11 = smov 128   ;;  %s369_s12 = smov 8  }
   0x8   :  { %42 = dma.hbm_to_vmem [thread:$0]  %s35_s28, 256, %s37_s30, [#allocation7], %s368_s11, %s368_s11, %s369_s12  }
   0x9   :  { %s370_s6 = smov [#allocation3]   ;;  %s49_s16 = sshll.u32 %s446_s3, 4  ;;  %s50_s16 = int_to_ptr.hbm [resolvable:$true] %s49_s16 }
   0xa   :  { %s23_s13 = sshll.u32 %s370_s6, 4  ;;  %s371_s1 = smov [#allocation8]   ;;  %s24_s13 = int_to_ptr.vmem [resolvable:$true] %s23_s13 }
   0xb   :  { %29 = dma.hbm_to_vmem [thread:$0]  %s22_s10, 256, %s24_s13, [#allocation4], %s368_s11, %s368_s11, %s369_s12  }
   0xc   :  { %s51_s17 = sshll.u32 %s371_s1, 4  ;;  %s52_s17 = int_to_ptr.vmem [resolvable:$true] %s51_s17 }
   0xd   :  { %57 = dma.hbm_to_vmem [thread:$0]  %s50_s16, 512, %s52_s17, [#allocation7], %s368_s11, %s368_s11, %s369_s12  }
   0xe   :  { %361 = dma.done.wait [#allocation4], 256  }
   0xf   :  { %362 = vsyncadd [#allocation4], 4294967040 }
  0x10   :  { %363 = dma.done.wait [#allocation7], 768  }
  0x11   :  { %364 = vsyncadd [#allocation7], 4294966528  ;;  %v79_v1 = vld [vmem:[#allocation6 + $0x8] sm:$0xff]  ;;  %v78_v2 = vld [vmem:[#allocation6] sm:$0xff]  ;;  %vm84_vm0 = vcmask 130048   ;;  %vm128_vm2 = vcmask 261120  }
  0x12   :  { %105 = vmatpush.msra.mxu0 %v79_v1  ;;  %v76_v3 = vld [vmem:[#allocation3] sm:$0xff]  ;;  %v123_v4 = vld [vmem:[#allocation8 + $0x18] sm:$0xff]  ;;  %v77_v5 = vld [vmem:[#allocation3 + $0x8] sm:$0xff]  ;;  %v372_v19 = vmov 0   ;;  %s229_s23 = sshll.u32 %s450_s7, 4  ;;  %vm220_vm9 = vcmask 122880   ;;  %s230_s23 = int_to_ptr.hbm [resolvable:$true] %s229_s23 }
  0x13   :  { %147 = vmatpush.msra.mxu1 %v123_v4  ;;  %247 = vmatpush.msra.mxu3 %v123_v4  ;;  %v122_v6 = vld [vmem:[#allocation8 + $0x10] sm:$0xff]  ;;  %v121_v7 = vld [vmem:[#allocation8 + $0x8] sm:$0xff]  ;;  %v120_v8 = vld [vmem:[#allocation8] sm:$0xff] }
  0x14   :  { %106 = vmatpush.msra.mxu0 %v78_v2  ;;  %v259_v9 = vld [vmem:[%s445_s2] ss:$0 sm:$0xff]  ;;  %258 = vset.pattern.permute.xlu0 %v372_v19 }
  0x15   :  { %240 = vmatmul.msk.f32.vlgmr.msra.gmra.mxu0 %vm84_vm0, %v76_v3  ;;  %148 = vmatpush.msra.mxu1 %v122_v6  ;;  %v165_v18 = vld [vmem:[#allocation2] sm:$0x1] }
  0x16   :  { %248 = vmatpush.msra.mxu3 %v122_v6  ;;  %168 = vperm.xlu0 %258, %v165_v18   ;;  %v260_v20 = vld [vmem:[%s447_s4] ss:$0 sm:$0xff]  ;;  %s373_s4 = smov [#allocation9]  }
  0x17   :  { %149 = vmatpush.msra.mxu1 %v121_v7  ;;  %v164_v29 = vld [vmem:[%s448_s5] sm:$0x1]  ;;  %s227_s5 = sshll.u32 %s373_s4, 4  ;;  %s228_s5 = int_to_ptr.vmem [resolvable:$true] %s227_s5 }
  0x18   :  { %249 = vmatpush.msra.mxu3 %v121_v7 }
  0x19   :  { %150 = vmatpush.msra.mxu1 %v120_v8 }
  0x1a   :  { %250 = vmatpush.msra.mxu3 %v120_v8 }
  0x1d   :  { %241 = vmatmul.msk.f32.gmra.mxu0 %vm84_vm0, %v77_v5 }
  0x88   :  { %v169_v30 = vpop.permute.xlu0 %168 }
  0x89   :  { %v171_v31 = vperm.slane %v169_v30, 0 }
  0x92   :  { %v108_v10 = vpop.f32.mrf.mxu0 }
  0x93   :  { %v109_v11 = vadd.f32 %v259_v9, %v108_v10 }
  0x95   :  { %v116_v12 = vmul.f32 0.01, %v109_v11  ;;  %vm114_vm1 = vcmp.gt.f32.partialorder %v109_v11, 0.0 }
  0x97   :  { %v118_v13 = vsel %vm114_vm1, %v109_v11, %v116_v12 }
  0x98   :  { %242 = vmatmul.msk.f32.vlgmr.msra.gmra.mxu1 %vm128_vm2, %v118_v13 }
  0x9a   :  { %v111_v14 = vpop.f32.mrf.mxu0 }
  0x9b   :  { %v112_v15 = vadd.f32 %v259_v9, %v111_v14 }
  0x9d   :  { %v117_v16 = vmul.f32 0.01, %v112_v15  ;;  %vm115_vm3 = vcmp.gt.f32.partialorder %v112_v15, 0.0 }
  0x9f   :  { %v119_v17 = vsel %vm115_vm3, %v112_v15, %v117_v16 }
  0xa0   :  { %243 = vmatmul.msk.f32.vlgmr.msra.gmra.mxu3 %vm128_vm2, %v119_v17 }
 0x115   :  { %v152_v21 = vpop.f32.mrf.mxu1 }
 0x116   :  { %v153_v23 = vadd.f32 %v260_v20, %v152_v21 }
 0x118   :  { %v160_v26 = vmul.f32 0.01, %v153_v23  ;;  %vm158_vm5 = vcmp.gt.f32.partialorder %v153_v23, 0.0 }
 0x11a   :  { %v162_v28 = vsel %vm158_vm5, %v153_v23, %v160_v26 }
 0x123   :  { %v155_v22 = vpop.f32.mrf.mxu3 }
 0x124   :  { %v156_v24 = vadd.f32 %v260_v20, %v155_v22 }
 0x126   :  { %vm159_vm4 = vcmp.gt.f32.partialorder %v156_v24, 0.0  ;;  %v161_v25 = vmul.f32 0.01, %v156_v24 }
 0x128   :  { %v163_v27 = vsel %vm159_vm4, %v156_v24, %v161_v25 }
 0x129   :  { %244 = vmatpush.xpose.msk.msra.mxu2 %vm128_vm2, %v163_v27 }
 0x12d   :  { %245 = vmatpush.xpose.msk.msra.mxu2 %vm128_vm2, %v162_v28 }
 0x130   :  { %246 = vmatmul.msk.f32.vlgmr.msra.gmra.mxu2 %vm128_vm2, %v164_v29 }
 0x1b3   :  { %v198_v32 = vpop.f32.mrf.mxu2 }
 0x1b4   :  { %v199_v33 = vadd.f32 %v198_v32, %v171_v31 }
 0x1b6   :  { %v201_v34 = vsub.f32 0.0, %v199_v33 }
 0x1b8   :  { %v202_v35 = vmul.f32 1.442695, %v201_v34 }
 0x1ba   :  { %261 = vpow2.f32 %v202_v35 }
 0x1c0   :  { %v262_v36 = vpop.eup %261 }
 0x1c1   :  { %v204_v37 = vadd.f32 1.0, %v262_v36 }
 0x1c3   :  { %263 = vrcp.f32 %v204_v37  ;;  %v216_v41 = vand.u32 2147483648, %v204_v37  ;;  %v214_v43 = vand.u32 2147483647, %v204_v37  ;;  %vm210_vm7 = vweird.f32 %v204_v37 }
 0x1c5   :  { %v217_v45 = vor.u32 1.1754944e-38, %v216_v41  ;;  %vm215_vm10 = vcmp.eq.f32.partialorder %v214_v43, 8.507059e+37 }
 0x1c9   :  { %v264_v38 = vpop.eup %263 }
 0x1ca   :  { %v206_v39 = vmul.f32 %v264_v38, %v204_v37  ;;  %vm211_vm6 = vweird.f32 %v264_v38 }
 0x1cb   :  { %vm212_vm8 = vmor %vm210_vm7, %vm211_vm6 }
 0x1cc   :  { %v207_v40 = vsub.f32 1.0, %v206_v39 }
 0x1ce   :  { %v208_v42 = vmul.f32 %v264_v38, %v207_v40 }
 0x1d0   :  { %v209_v44 = vadd.f32 %v264_v38, %v208_v42 }
 0x1d2   :  { %v213_v46 = vsel %vm212_vm8, %v264_v38, %v209_v44 }
 0x1d3   :  { %v218_v47 = vsel %vm215_vm10, %v217_v45, %v213_v46 }
 0x1d4   :  { %221 = vst.msk [vmem:[#allocation9] sm:$0x1] %vm220_vm9, %v218_v47 }
 0x1d5   :  { %232 = dma.vmem_to_hbm [thread:$0]  %s228_s5, 16, %s230_s23, [#allocation5]  }
 0x1d6   :  { %365 = dma.done.wait [#allocation5], 16  }
 0x1d7   :  { %366 = vsyncadd [#allocation5], 4294967280 }
 0x1d8   :  { %237 = vsyncpa [#allocation4], 1 }
 0x1d9   :  { %238 = vsyncpa [#allocation7], 1 }
 0x1da   :  { %239 = vsyncpa [#allocation5], 1 }

</bundles_post_ra>
